<compile_context>
chip_gen: v6e
topology: v6e:2x2x1
jax: 0.10.0
libtpu: 0.0.40
codegen_flags: <defaults>
</compile_context>

<pallas_src>
import functools

import jax
import jax.numpy as jnp
from jax import lax
from jax.experimental import pallas as pl
from jax.experimental.pallas import tpu as pltpu


def _embedding_bag_kernel(starts_ref, lengths_ref, data_ref, w_ref, out_ref,
                          *, bags_per_tile):
    """Mean-pool `bags_per_tile` bags per grid step.

    starts_ref, lengths_ref : SMEM (Bp,) int32   per-bag start offset / length
    data_ref               : SMEM (N+1,) int32   concatenated feature ids
    w_ref                  : VMEM (V, D)         embedding table (resident)
    out_ref                : VMEM (bags_per_tile, D) output block
    """
    tile = pl.program_id(0)
    D = w_ref.shape[1]

    for b in range(bags_per_tile):          # static unroll, 8 bags per step
        bag = tile * bags_per_tile + b
        start = starts_ref[bag]
        n = lengths_ref[bag]

        def body(j, acc):
            idx = data_ref[start + j]
            row = w_ref[pl.ds(idx, 1), :].astype(jnp.float32)   # (1, D)
            return acc + row

        acc = lax.fori_loop(0, n, body, jnp.zeros((1, D), jnp.float32))

        # mean pooling; empty bags -> zeros (matches F.embedding_bag).
        inv = jnp.where(n > 0, 1.0 / jnp.maximum(n, 1).astype(jnp.float32), 0.0)
        out_ref[pl.ds(b, 1), :] = (acc * inv).astype(out_ref.dtype)


def featurized_embedding_forward(offsets, data, weight, max_norm=None,
                                 bags_per_tile=8):
    """JAX/Pallas equivalent of FeaturizedEmbedding.forward / .get.

    offsets : (B+1,) int  TensorList offsets (offsets[0]==0, offsets[-1]==N)
    data    : (N,)   int  concatenated feature ids of all bags
    weight  : (V, D) float embedding table
    returns : (B, D)  mean-pooled bag embeddings
    """
    B = int(offsets.shape[0]) - 1
    V, D = weight.shape
    if B == 0:
        # matches: `if input_.size(0) == 0: return torch.empty((0, dim))`
        return jnp.empty((0, D), dtype=weight.dtype)

    w = weight
    if max_norm is not None:
        # forward-equivalent of embedding_bag's max_norm renorm (row-wise
        # L2 clip); PyTorch does it in-place only for looked-up rows, but the
        # forward output is identical when applied to every row.
        w32 = w.astype(jnp.float32)
        norms = jnp.sqrt(jnp.sum(jnp.square(w32), axis=1, keepdims=True))
        scale = jnp.minimum(1.0, max_norm / jnp.maximum(norms, 1e-30))
        w = (w32 * scale).astype(weight.dtype)

    offsets = offsets.astype(jnp.int32)
    data = data.astype(jnp.int32)
    starts = offsets[:-1]
    lengths = offsets[1:] - offsets[:-1]

    # Pad bag count to a multiple of the per-step tile (padded bags are empty).
    Bp = ((B + bags_per_tile - 1) // bags_per_tile) * bags_per_tile
    pad = Bp - B
    starts_p = jnp.pad(starts, (0, pad))
    lengths_p = jnp.pad(lengths, (0, pad))
    data_p = jnp.pad(data, (0, 1))  # keep the SMEM id buffer non-empty

    kernel = functools.partial(_embedding_bag_kernel,
                               bags_per_tile=bags_per_tile)

    out = pl.pallas_call(
        kernel,
        out_shape=jax.ShapeDtypeStruct((Bp, D), weight.dtype),
        grid_spec=pltpu.PrefetchScalarGridSpec(
            num_scalar_prefetch=3,
            grid=(Bp // bags_per_tile,),
            in_specs=[
                # whole table resident in VMEM (constant block index)
                pl.BlockSpec((V, D), lambda i, s, l, d: (0, 0)),
            ],
            out_specs=pl.BlockSpec((bags_per_tile, D),
                                   lambda i, s, l, d: (i, 0)),
        ),
        compiler_params=pltpu.CompilerParams(
            dimension_semantics=("parallel",),
        ),
    )(starts_p, lengths_p, data_p, w)

    return out[:B]


def _reference(offsets, data, weight, max_norm=None):
    """Pure-JAX reference for F.embedding_bag(..., mode='mean')."""
    B = offsets.shape[0] - 1
    w = weight.astype(jnp.float32)
    if max_norm is not None:
        norms = jnp.sqrt(jnp.sum(jnp.square(w), axis=1, keepdims=True))
        scale = jnp.minimum(1.0, max_norm / jnp.maximum(norms, 1e-30))
        w = w * scale
    lengths = (offsets[1:] - offsets[:-1]).astype(jnp.int32)
    bag_ids = jnp.repeat(jnp.arange(B, dtype=jnp.int32), lengths,
                         total_repeat_length=data.shape[0])
    sums = jax.ops.segment_sum(w[data], bag_ids, num_segments=B)
    means = jnp.where(lengths[:, None] > 0,
                      sums / jnp.maximum(lengths, 1)[:, None].astype(jnp.float32),
                      0.0)
    return means.astype(weight.dtype)


if __name__ == "__main__":
    key = jax.random.PRNGKey(0)
    k1, k2 = jax.random.split(key, 2)

    # Small shapes consistent with the module: a featurized embedding table of
    # V=64 features, dim D=128, and B=10 bags of variable length (one empty).
    V, D = 64, 128
    lengths = jnp.array([3, 0, 5, 2, 1, 4, 7, 2, 3, 6], dtype=jnp.int32)
    B = int(lengths.shape[0])
    offsets = jnp.concatenate(
        [jnp.zeros((1,), jnp.int32), jnp.cumsum(lengths).astype(jnp.int32)])
    N = int(offsets[-1])

    data = jax.random.randint(k1, (N,), 0, V, dtype=jnp.int32)
    weight = jax.random.normal(k2, (V, D), dtype=jnp.float32)

    # plain lookup (max_norm=None)
    out = jax.block_until_ready(featurized_embedding_forward(offsets, data, weight))
    ref = jax.block_until_ready(_reference(offsets, data, weight))
    assert out.shape == (B, D), out.shape
    assert jnp.allclose(out, ref, rtol=1e-5, atol=1e-5), (
        float(jnp.max(jnp.abs(out - ref))))

    # max_norm path
    out_mn = jax.block_until_ready(
        featurized_embedding_forward(offsets, data, weight, max_norm=1.0))
    ref_mn = jax.block_until_ready(_reference(offsets, data, weight, max_norm=1.0))
    assert jnp.allclose(out_mn, ref_mn, rtol=1e-5, atol=1e-5), (
        float(jnp.max(jnp.abs(out_mn - ref_mn))))

    print("KERNEL_OK")
</pallas_src>

<mosaic_0001>
module attributes {stable_mosaic.version = 11 : i64} {
  func.func @_embedding_bag_kernel(%arg0: i32, %arg1: memref<16xi32, #tpu.memory_space<smem>>, %arg2: memref<16xi32, #tpu.memory_space<smem>>, %arg3: memref<34xi32, #tpu.memory_space<smem>>, %arg4: memref<64x128xf32, #tpu.memory_space<vmem>>, %arg5: memref<8x128xf32, #tpu.memory_space<vmem>>) attributes {dimension_semantics = [#tpu.dimension_semantics<parallel>], iteration_bounds = array<i64: 2>, scalar_prefetch = 3 : i64, scratch_operands = 0 : i64, tpu.core_type = #tpu.core_type<tc>, window_params = [{pipeline_mode = #tpu.pipeline_mode<synchronous>, transform_indices = @transform_0, window_bounds = array<i64: 64, 128>}, {transform_indices = @transform_1, window_bounds = array<i64: 8, 128>}]} {
    %c8_i32 = arith.constant 8 : i32
    %0 = arith.muli %arg0, %c8_i32 : i32
    %c0_i32 = arith.constant 0 : i32
    %1 = arith.addi %0, %c0_i32 : i32
    %2 = arith.index_cast %1 : i32 to index
    %3 = memref.load %arg1[%2] : memref<16xi32, #tpu.memory_space<smem>>
    %4 = arith.index_cast %1 : i32 to index
    %5 = memref.load %arg2[%4] : memref<16xi32, #tpu.memory_space<smem>>
    %cst = arith.constant 0.000000e+00 : f32
    %6 = vector.broadcast %cst : f32 to vector<1x128xf32>
    %c0_i32_0 = arith.constant 0 : i32
    %7 = arith.subi %5, %c0_i32_0 : i32
    %8 = arith.addi %c0_i32_0, %7 : i32
    %c1_i32 = arith.constant 1 : i32
    %9 = scf.for %arg6 = %c0_i32_0 to %8 step %c1_i32 iter_args(%arg7 = %6) -> (vector<1x128xf32>)  : i32 {
      %144 = arith.addi %3, %arg6 : i32
      %145 = arith.index_cast %144 : i32 to index
      %146 = memref.load %arg3[%145] : memref<34xi32, #tpu.memory_space<smem>>
      %147 = arith.index_cast %146 : i32 to index
      %c0_70 = arith.constant 0 : index
      %148 = vector.load %arg4[%147, %c0_70] : memref<64x128xf32, #tpu.memory_space<vmem>>, vector<1x128xf32>
      %149 = arith.addf %arg7, %148 : vector<1x128xf32>
      scf.yield %149 : vector<1x128xf32>
    }
    %c0_i32_1 = arith.constant 0 : i32
    %10 = arith.cmpi sgt, %5, %c0_i32_1 : i32
    %c1_i32_2 = arith.constant 1 : i32
    %11 = arith.maxsi %5, %c1_i32_2 : i32
    %12 = arith.sitofp %11 : i32 to f32
    %cst_3 = arith.constant 1.000000e+00 : f32
    %13 = arith.divf %cst_3, %12 : f32
    %cst_4 = arith.constant 0.000000e+00 : f32
    %14 = arith.select %10, %13, %cst_4 : f32
    %15 = vector.broadcast %14 : f32 to vector<1x128xf32>
    %16 = arith.mulf %9, %15 : vector<1x128xf32>
    %c0 = arith.constant 0 : index
    %c0_5 = arith.constant 0 : index
    %17 = vector.load %arg5[%c0, %c0_5] : memref<8x128xf32, #tpu.memory_space<vmem>>, vector<1x128xf32>
    tpu.vector_store %arg5[%c0, %c0_5], %16 {strides = array<i32>} : memref<8x128xf32, #tpu.memory_space<vmem>>, vector<1x128xf32>,
    %c8_i32_6 = arith.constant 8 : i32
    %18 = arith.muli %arg0, %c8_i32_6 : i32
    %c1_i32_7 = arith.constant 1 : i32
    %19 = arith.addi %18, %c1_i32_7 : i32
    %20 = arith.index_cast %19 : i32 to index
    %21 = memref.load %arg1[%20] : memref<16xi32, #tpu.memory_space<smem>>
    %22 = arith.index_cast %19 : i32 to index
    %23 = memref.load %arg2[%22] : memref<16xi32, #tpu.memory_space<smem>>
    %cst_8 = arith.constant 0.000000e+00 : f32
    %24 = vector.broadcast %cst_8 : f32 to vector<1x128xf32>
    %c0_i32_9 = arith.constant 0 : i32
    %25 = arith.subi %23, %c0_i32_9 : i32
    %26 = arith.addi %c0_i32_9, %25 : i32
    %c1_i32_10 = arith.constant 1 : i32
    %27 = scf.for %arg6 = %c0_i32_9 to %26 step %c1_i32_10 iter_args(%arg7 = %24) -> (vector<1x128xf32>)  : i32 {
      %144 = arith.addi %21, %arg6 : i32
      %145 = arith.index_cast %144 : i32 to index
      %146 = memref.load %arg3[%145] : memref<34xi32, #tpu.memory_space<smem>>
      %147 = arith.index_cast %146 : i32 to index
      %c0_70 = arith.constant 0 : index
      %148 = vector.load %arg4[%147, %c0_70] : memref<64x128xf32, #tpu.memory_space<vmem>>, vector<1x128xf32>
      %149 = arith.addf %arg7, %148 : vector<1x128xf32>
      scf.yield %149 : vector<1x128xf32>
    }
    %c0_i32_11 = arith.constant 0 : i32
    %28 = arith.cmpi sgt, %23, %c0_i32_11 : i32
    %c1_i32_12 = arith.constant 1 : i32
    %29 = arith.maxsi %23, %c1_i32_12 : i32
    %30 = arith.sitofp %29 : i32 to f32
    %cst_13 = arith.constant 1.000000e+00 : f32
    %31 = arith.divf %cst_13, %30 : f32
    %cst_14 = arith.constant 0.000000e+00 : f32
    %32 = arith.select %28, %31, %cst_14 : f32
    %33 = vector.broadcast %32 : f32 to vector<1x128xf32>
    %34 = arith.mulf %27, %33 : vector<1x128xf32>
    %c1 = arith.constant 1 : index
    %c0_15 = arith.constant 0 : index
    %35 = vector.load %arg5[%c1, %c0_15] : memref<8x128xf32, #tpu.memory_space<vmem>>, vector<1x128xf32>
    tpu.vector_store %arg5[%c1, %c0_15], %34 {strides = array<i32>} : memref<8x128xf32, #tpu.memory_space<vmem>>, vector<1x128xf32>,
    %c8_i32_16 = arith.constant 8 : i32
    %36 = arith.muli %arg0, %c8_i32_16 : i32
    %c2_i32 = arith.constant 2 : i32
    %37 = arith.addi %36, %c2_i32 : i32
    %38 = arith.index_cast %37 : i32 to index
    %39 = memref.load %arg1[%38] : memref<16xi32, #tpu.memory_space<smem>>
    %40 = arith.index_cast %37 : i32 to index
    %41 = memref.load %arg2[%40] : memref<16xi32, #tpu.memory_space<smem>>
    %cst_17 = arith.constant 0.000000e+00 : f32
    %42 = vector.broadcast %cst_17 : f32 to vector<1x128xf32>
    %c0_i32_18 = arith.constant 0 : i32
    %43 = arith.subi %41, %c0_i32_18 : i32
    %44 = arith.addi %c0_i32_18, %43 : i32
    %c1_i32_19 = arith.constant 1 : i32
    %45 = scf.for %arg6 = %c0_i32_18 to %44 step %c1_i32_19 iter_args(%arg7 = %42) -> (vector<1x128xf32>)  : i32 {
      %144 = arith.addi %39, %arg6 : i32
      %145 = arith.index_cast %144 : i32 to index
      %146 = memref.load %arg3[%145] : memref<34xi32, #tpu.memory_space<smem>>
      %147 = arith.index_cast %146 : i32 to index
      %c0_70 = arith.constant 0 : index
      %148 = vector.load %arg4[%147, %c0_70] : memref<64x128xf32, #tpu.memory_space<vmem>>, vector<1x128xf32>
      %149 = arith.addf %arg7, %148 : vector<1x128xf32>
      scf.yield %149 : vector<1x128xf32>
    }
    %c0_i32_20 = arith.constant 0 : i32
    %46 = arith.cmpi sgt, %41, %c0_i32_20 : i32
    %c1_i32_21 = arith.constant 1 : i32
    %47 = arith.maxsi %41, %c1_i32_21 : i32
    %48 = arith.sitofp %47 : i32 to f32
    %cst_22 = arith.constant 1.000000e+00 : f32
    %49 = arith.divf %cst_22, %48 : f32
    %cst_23 = arith.constant 0.000000e+00 : f32
    %50 = arith.select %46, %49, %cst_23 : f32
    %51 = vector.broadcast %50 : f32 to vector<1x128xf32>
    %52 = arith.mulf %45, %51 : vector<1x128xf32>
    %c2 = arith.constant 2 : index
    %c0_24 = arith.constant 0 : index
    %53 = vector.load %arg5[%c2, %c0_24] : memref<8x128xf32, #tpu.memory_space<vmem>>, vector<1x128xf32>
    tpu.vector_store %arg5[%c2, %c0_24], %52 {strides = array<i32>} : memref<8x128xf32, #tpu.memory_space<vmem>>, vector<1x128xf32>,
    %c8_i32_25 = arith.constant 8 : i32
    %54 = arith.muli %arg0, %c8_i32_25 : i32
    %c3_i32 = arith.constant 3 : i32
    %55 = arith.addi %54, %c3_i32 : i32
    %56 = arith.index_cast %55 : i32 to index
    %57 = memref.load %arg1[%56] : memref<16xi32, #tpu.memory_space<smem>>
    %58 = arith.index_cast %55 : i32 to index
    %59 = memref.load %arg2[%58] : memref<16xi32, #tpu.memory_space<smem>>
    %cst_26 = arith.constant 0.000000e+00 : f32
    %60 = vector.broadcast %cst_26 : f32 to vector<1x128xf32>
    %c0_i32_27 = arith.constant 0 : i32
    %61 = arith.subi %59, %c0_i32_27 : i32
    %62 = arith.addi %c0_i32_27, %61 : i32
    %c1_i32_28 = arith.constant 1 : i32
    %63 = scf.for %arg6 = %c0_i32_27 to %62 step %c1_i32_28 iter_args(%arg7 = %60) -> (vector<1x128xf32>)  : i32 {
      %144 = arith.addi %57, %arg6 : i32
      %145 = arith.index_cast %144 : i32 to index
      %146 = memref.load %arg3[%145] : memref<34xi32, #tpu.memory_space<smem>>
      %147 = arith.index_cast %146 : i32 to index
      %c0_70 = arith.constant 0 : index
      %148 = vector.load %arg4[%147, %c0_70] : memref<64x128xf32, #tpu.memory_space<vmem>>, vector<1x128xf32>
      %149 = arith.addf %arg7, %148 : vector<1x128xf32>
      scf.yield %149 : vector<1x128xf32>
    }
    %c0_i32_29 = arith.constant 0 : i32
    %64 = arith.cmpi sgt, %59, %c0_i32_29 : i32
    %c1_i32_30 = arith.constant 1 : i32
    %65 = arith.maxsi %59, %c1_i32_30 : i32
    %66 = arith.sitofp %65 : i32 to f32
    %cst_31 = arith.constant 1.000000e+00 : f32
    %67 = arith.divf %cst_31, %66 : f32
    %cst_32 = arith.constant 0.000000e+00 : f32
    %68 = arith.select %64, %67, %cst_32 : f32
    %69 = vector.broadcast %68 : f32 to vector<1x128xf32>
    %70 = arith.mulf %63, %69 : vector<1x128xf32>
    %c3 = arith.constant 3 : index
    %c0_33 = arith.constant 0 : index
    %71 = vector.load %arg5[%c3, %c0_33] : memref<8x128xf32, #tpu.memory_space<vmem>>, vector<1x128xf32>
    tpu.vector_store %arg5[%c3, %c0_33], %70 {strides = array<i32>} : memref<8x128xf32, #tpu.memory_space<vmem>>, vector<1x128xf32>,
    %c8_i32_34 = arith.constant 8 : i32
    %72 = arith.muli %arg0, %c8_i32_34 : i32
    %c4_i32 = arith.constant 4 : i32
    %73 = arith.addi %72, %c4_i32 : i32
    %74 = arith.index_cast %73 : i32 to index
    %75 = memref.load %arg1[%74] : memref<16xi32, #tpu.memory_space<smem>>
    %76 = arith.index_cast %73 : i32 to index
    %77 = memref.load %arg2[%76] : memref<16xi32, #tpu.memory_space<smem>>
    %cst_35 = arith.constant 0.000000e+00 : f32
    %78 = vector.broadcast %cst_35 : f32 to vector<1x128xf32>
    %c0_i32_36 = arith.constant 0 : i32
    %79 = arith.subi %77, %c0_i32_36 : i32
    %80 = arith.addi %c0_i32_36, %79 : i32
    %c1_i32_37 = arith.constant 1 : i32
    %81 = scf.for %arg6 = %c0_i32_36 to %80 step %c1_i32_37 iter_args(%arg7 = %78) -> (vector<1x128xf32>)  : i32 {
      %144 = arith.addi %75, %arg6 : i32
      %145 = arith.index_cast %144 : i32 to index
      %146 = memref.load %arg3[%145] : memref<34xi32, #tpu.memory_space<smem>>
      %147 = arith.index_cast %146 : i32 to index
      %c0_70 = arith.constant 0 : index
      %148 = vector.load %arg4[%147, %c0_70] : memref<64x128xf32, #tpu.memory_space<vmem>>, vector<1x128xf32>
      %149 = arith.addf %arg7, %148 : vector<1x128xf32>
      scf.yield %149 : vector<1x128xf32>
    }
    %c0_i32_38 = arith.constant 0 : i32
    %82 = arith.cmpi sgt, %77, %c0_i32_38 : i32
    %c1_i32_39 = arith.constant 1 : i32
    %83 = arith.maxsi %77, %c1_i32_39 : i32
    %84 = arith.sitofp %83 : i32 to f32
    %cst_40 = arith.constant 1.000000e+00 : f32
    %85 = arith.divf %cst_40, %84 : f32
    %cst_41 = arith.constant 0.000000e+00 : f32
    %86 = arith.select %82, %85, %cst_41 : f32
    %87 = vector.broadcast %86 : f32 to vector<1x128xf32>
    %88 = arith.mulf %81, %87 : vector<1x128xf32>
    %c4 = arith.constant 4 : index
    %c0_42 = arith.constant 0 : index
    %89 = vector.load %arg5[%c4, %c0_42] : memref<8x128xf32, #tpu.memory_space<vmem>>, vector<1x128xf32>
    tpu.vector_store %arg5[%c4, %c0_42], %88 {strides = array<i32>} : memref<8x128xf32, #tpu.memory_space<vmem>>, vector<1x128xf32>,
    %c8_i32_43 = arith.constant 8 : i32
    %90 = arith.muli %arg0, %c8_i32_43 : i32
    %c5_i32 = arith.constant 5 : i32
    %91 = arith.addi %90, %c5_i32 : i32
    %92 = arith.index_cast %91 : i32 to index
    %93 = memref.load %arg1[%92] : memref<16xi32, #tpu.memory_space<smem>>
    %94 = arith.index_cast %91 : i32 to index
    %95 = memref.load %arg2[%94] : memref<16xi32, #tpu.memory_space<smem>>
    %cst_44 = arith.constant 0.000000e+00 : f32
    %96 = vector.broadcast %cst_44 : f32 to vector<1x128xf32>
    %c0_i32_45 = arith.constant 0 : i32
    %97 = arith.subi %95, %c0_i32_45 : i32
    %98 = arith.addi %c0_i32_45, %97 : i32
    %c1_i32_46 = arith.constant 1 : i32
    %99 = scf.for %arg6 = %c0_i32_45 to %98 step %c1_i32_46 iter_args(%arg7 = %96) -> (vector<1x128xf32>)  : i32 {
      %144 = arith.addi %93, %arg6 : i32
      %145 = arith.index_cast %144 : i32 to index
      %146 = memref.load %arg3[%145] : memref<34xi32, #tpu.memory_space<smem>>
      %147 = arith.index_cast %146 : i32 to index
      %c0_70 = arith.constant 0 : index
      %148 = vector.load %arg4[%147, %c0_70] : memref<64x128xf32, #tpu.memory_space<vmem>>, vector<1x128xf32>
      %149 = arith.addf %arg7, %148 : vector<1x128xf32>
      scf.yield %149 : vector<1x128xf32>
    }
    %c0_i32_47 = arith.constant 0 : i32
    %100 = arith.cmpi sgt, %95, %c0_i32_47 : i32
    %c1_i32_48 = arith.constant 1 : i32
    %101 = arith.maxsi %95, %c1_i32_48 : i32
    %102 = arith.sitofp %101 : i32 to f32
    %cst_49 = arith.constant 1.000000e+00 : f32
    %103 = arith.divf %cst_49, %102 : f32
    %cst_50 = arith.constant 0.000000e+00 : f32
    %104 = arith.select %100, %103, %cst_50 : f32
    %105 = vector.broadcast %104 : f32 to vector<1x128xf32>
    %106 = arith.mulf %99, %105 : vector<1x128xf32>
    %c5 = arith.constant 5 : index
    %c0_51 = arith.constant 0 : index
    %107 = vector.load %arg5[%c5, %c0_51] : memref<8x128xf32, #tpu.memory_space<vmem>>, vector<1x128xf32>
    tpu.vector_store %arg5[%c5, %c0_51], %106 {strides = array<i32>} : memref<8x128xf32, #tpu.memory_space<vmem>>, vector<1x128xf32>,
    %c8_i32_52 = arith.constant 8 : i32
    %108 = arith.muli %arg0, %c8_i32_52 : i32
    %c6_i32 = arith.constant 6 : i32
    %109 = arith.addi %108, %c6_i32 : i32
    %110 = arith.index_cast %109 : i32 to index
    %111 = memref.load %arg1[%110] : memref<16xi32, #tpu.memory_space<smem>>
    %112 = arith.index_cast %109 : i32 to index
    %113 = memref.load %arg2[%112] : memref<16xi32, #tpu.memory_space<smem>>
    %cst_53 = arith.constant 0.000000e+00 : f32
    %114 = vector.broadcast %cst_53 : f32 to vector<1x128xf32>
    %c0_i32_54 = arith.constant 0 : i32
    %115 = arith.subi %113, %c0_i32_54 : i32
    %116 = arith.addi %c0_i32_54, %115 : i32
    %c1_i32_55 = arith.constant 1 : i32
    %117 = scf.for %arg6 = %c0_i32_54 to %116 step %c1_i32_55 iter_args(%arg7 = %114) -> (vector<1x128xf32>)  : i32 {
      %144 = arith.addi %111, %arg6 : i32
      %145 = arith.index_cast %144 : i32 to index
      %146 = memref.load %arg3[%145] : memref<34xi32, #tpu.memory_space<smem>>
      %147 = arith.index_cast %146 : i32 to index
      %c0_70 = arith.constant 0 : index
      %148 = vector.load %arg4[%147, %c0_70] : memref<64x128xf32, #tpu.memory_space<vmem>>, vector<1x128xf32>
      %149 = arith.addf %arg7, %148 : vector<1x128xf32>
      scf.yield %149 : vector<1x128xf32>
    }
    %c0_i32_56 = arith.constant 0 : i32
    %118 = arith.cmpi sgt, %113, %c0_i32_56 : i32
    %c1_i32_57 = arith.constant 1 : i32
    %119 = arith.maxsi %113, %c1_i32_57 : i32
    %120 = arith.sitofp %119 : i32 to f32
    %cst_58 = arith.constant 1.000000e+00 : f32
    %121 = arith.divf %cst_58, %120 : f32
    %cst_59 = arith.constant 0.000000e+00 : f32
    %122 = arith.select %118, %121, %cst_59 : f32
    %123 = vector.broadcast %122 : f32 to vector<1x128xf32>
    %124 = arith.mulf %117, %123 : vector<1x128xf32>
    %c6 = arith.constant 6 : index
    %c0_60 = arith.constant 0 : index
    %125 = vector.load %arg5[%c6, %c0_60] : memref<8x128xf32, #tpu.memory_space<vmem>>, vector<1x128xf32>
    tpu.vector_store %arg5[%c6, %c0_60], %124 {strides = array<i32>} : memref<8x128xf32, #tpu.memory_space<vmem>>, vector<1x128xf32>,
    %c8_i32_61 = arith.constant 8 : i32
    %126 = arith.muli %arg0, %c8_i32_61 : i32
    %c7_i32 = arith.constant 7 : i32
    %127 = arith.addi %126, %c7_i32 : i32
    %128 = arith.index_cast %127 : i32 to index
    %129 = memref.load %arg1[%128] : memref<16xi32, #tpu.memory_space<smem>>
    %130 = arith.index_cast %127 : i32 to index
    %131 = memref.load %arg2[%130] : memref<16xi32, #tpu.memory_space<smem>>
    %cst_62 = arith.constant 0.000000e+00 : f32
    %132 = vector.broadcast %cst_62 : f32 to vector<1x128xf32>
    %c0_i32_63 = arith.constant 0 : i32
    %133 = arith.subi %131, %c0_i32_63 : i32
    %134 = arith.addi %c0_i32_63, %133 : i32
    %c1_i32_64 = arith.constant 1 : i32
    %135 = scf.for %arg6 = %c0_i32_63 to %134 step %c1_i32_64 iter_args(%arg7 = %132) -> (vector<1x128xf32>)  : i32 {
      %144 = arith.addi %129, %arg6 : i32
      %145 = arith.index_cast %144 : i32 to index
      %146 = memref.load %arg3[%145] : memref<34xi32, #tpu.memory_space<smem>>
      %147 = arith.index_cast %146 : i32 to index
      %c0_70 = arith.constant 0 : index
      %148 = vector.load %arg4[%147, %c0_70] : memref<64x128xf32, #tpu.memory_space<vmem>>, vector<1x128xf32>
      %149 = arith.addf %arg7, %148 : vector<1x128xf32>
      scf.yield %149 : vector<1x128xf32>
    }
    %c0_i32_65 = arith.constant 0 : i32
    %136 = arith.cmpi sgt, %131, %c0_i32_65 : i32
    %c1_i32_66 = arith.constant 1 : i32
    %137 = arith.maxsi %131, %c1_i32_66 : i32
    %138 = arith.sitofp %137 : i32 to f32
    %cst_67 = arith.constant 1.000000e+00 : f32
    %139 = arith.divf %cst_67, %138 : f32
    %cst_68 = arith.constant 0.000000e+00 : f32
    %140 = arith.select %136, %139, %cst_68 : f32
    %141 = vector.broadcast %140 : f32 to vector<1x128xf32>
    %142 = arith.mulf %135, %141 : vector<1x128xf32>
    %c7 = arith.constant 7 : index
    %c0_69 = arith.constant 0 : index
    %143 = vector.load %arg5[%c7, %c0_69] : memref<8x128xf32, #tpu.memory_space<vmem>>, vector<1x128xf32>
    tpu.vector_store %arg5[%c7, %c0_69], %142 {strides = array<i32>} : memref<8x128xf32, #tpu.memory_space<vmem>>, vector<1x128xf32>,
    return
  }
  func.func @transform_0(%arg0: i32, %arg1: memref<16xi32, #tpu.memory_space<smem>>, %arg2: memref<16xi32, #tpu.memory_space<smem>>, %arg3: memref<34xi32, #tpu.memory_space<smem>>) -> (i32, i32) {
    %c0_i32 = arith.constant 0 : i32
    %c0_i32_0 = arith.constant 0 : i32
    %c0_i32_1 = arith.constant 0 : i32
    return %c0_i32, %c0_i32_0 : i32, i32
  }
  func.func @transform_1(%arg0: i32, %arg1: memref<16xi32, #tpu.memory_space<smem>>, %arg2: memref<16xi32, #tpu.memory_space<smem>>, %arg3: memref<34xi32, #tpu.memory_space<smem>>) -> (i32, i32) {
    %c0_i32 = arith.constant 0 : i32
    %c0_i32_0 = arith.constant 0 : i32
    return %arg0, %c0_i32 : i32, i32
  }
}

</mosaic_0001>

<bundles_post_ra>
// kernel: tpu_custom_call.1
= control target key start
LH: loop header
LB: loop body
LE: loop exit
PB: predicated region body
PF: predicated region fallthrough
CT: control target
= control target key end

     0   :  { %s1094_s15 = smov [#allocation3]   ;;  %s1339_s0 = inlined_call_operand.hbm [shape: s32[16], index: 0, kind: input, shape index: {}]   ;;  %s1340_s3 = inlined_call_operand.hbm [shape: f32[64,128], index: 3, kind: input, shape index: {}]   ;;  %s1341_s4 = inlined_call_operand.hbm [shape: f32[16,128], index: 4, kind: output, shape index: {}]   ;;  %s1342_s1 = inlined_call_operand.vmem [shape: s32[16], index: 1, kind: input, shape index: {}]   ;;  %s1343_s2 = inlined_call_operand.vmem [shape: s32[34], index: 2, kind: input, shape index: {}]  }
   0x1   :  { %10 = dma.hbm_to_smem %s1339_s0, 16, %s1094_s15, [#allocation2] }
   0x2   :  { %s11_s20 = sshll.u32 %s1342_s1, 4  ;;  %s15_s23 = sshll.u32 %s1343_s2, 4  ;;  %s12_s20 = int_to_ptr.vmem [resolvable:$true] %s11_s20  ;;  %s16_s23 = int_to_ptr.vmem [resolvable:$true] %s15_s23 }
   0x3   :  { %s784_s24 = scalar_lea.vmem %s12_s20, 16  ;;  %p789_p1 = scmp.lt.s32.totalorder %s12_s20, %s12_s20 }
   0x4   :  { %p785_p0 = scmp.ne.s32.totalorder %s12_s20, %s784_s24  ;;  %p790_p2 = scmp.lt.s32.totalorder %s784_s24, %s784_s24 }
   0x6   :  { %p791_p3 = por %p790_p2, %p789_p1 }
   0x8   :  { %p792_p4 = pnand %p791_p3, %p785_p0 }
   0xa   :  { %795 = shalt.err (!%p792_p4)  }
   0xb   :  { %s1095_s25 = smov [#allocation4]   ;;  %s796_s0 = scalar_lea.vmem %s16_s23, 16 }
   0xc   :  { %14 = dma.vmem_to_smem %s12_s20, 16, %s1095_s25, [#allocation2] }
   0xd   :  { %p797_p5 = scmp.ne.s32.totalorder %s16_s23, %s796_s0  ;;  %p801_p6 = scmp.lt.s32.totalorder %s16_s23, %s16_s23 }
   0xe   :  { %p802_p7 = scmp.lt.s32.totalorder %s796_s0, %s796_s0 }
  0x10   :  { %p803_p8 = por %p802_p7, %p801_p6 }
  0x12   :  { %p804_p9 = pnand %p803_p8, %p797_p5 }
  0x14   :  { %807 = shalt.err (!%p804_p9)  }
  0x15   :  { %s1096_s1 = smov [#allocation5]  }
  0x16   :  { %18 = dma.vmem_to_smem %s16_s23, 16, %s1096_s1, [#allocation2] }
  0x17   :  { %972 = dma.done.wait [#allocation2], 48 }
  0x18   :  { %973 = vsyncadd [#allocation2], 4294967248 }
  0x19   :  { %20 = sfence }
  0x1a   :  { %21 = vsyncpa [#allocation7], 0 }
  0x1b   :  { %22 = vsyncpa [#allocation8], 0 }
  0x1c   :  { %24 = vsyncpa [#allocation8 + $0x1], 0  ;;  %s1135_s2 = smov 0   ;;  %s1137_s26 = smov 0  }
  0x1d   :  { %s1139_s27 = smov 0   ;;  %s1141_s28 = smov 0  }
  0x1e LB: > { %s1156_s29 = sadd.s32 4294967295, %s996_s28   ;;  %s478_s30 = sadd.s32 4294967294, %s996_s28   ;;  %s996_s28 = sphi %s1141_s28, %s1351_s28   ;;  %s992_s27 = sphi %s1139_s27, %s1350_s27   ;;  %s988_s26 = sphi %s1137_s26, %s1349_s26   ;;  %s984_s2 = sphi %s1135_s2, %s1348_s2  }
  0x1f   : > { %s1160_s5 = sadd.s32 1, %s996_s28   ;;  %s58_s6 = sadd.s32 1, %s992_s27 }
  0x20   : > { %s55_s7 = ssub.s32 %s996_s28, %s1160_s5  ;;  %p68_p10 = scmp.ne.s32.totalorder %s992_s27, %s988_s26 }
  0x21   : > { %p56_p11 = scmp.eq.s32.totalorder %s55_s7, 0  ;;  %p69_p12 = scmp.eq.s32.totalorder %s1156_s29, 1 }
  0x22   : > { %p74_p13 = scmp.ne.s32.totalorder %s988_s26, %s984_s2  ;;  %p75_p0 = scmp.eq.s32.totalorder %s478_s30, 1 }
  0x23   : > { %s1171_s8 = scalar_select %p56_p11, %s992_s27, %s58_s6  }
  0x24   : > { %p1173_p1 = por %p69_p12, %p68_p10  ;;  %p1177_p2 = por %p75_p0, %p74_p13 }
  0x25   : > { %p479_p3 = scmp.ge.s32.totalorder %s996_s28, 1  ;;  %p82_p4 = scmp.lt.s32.totalorder %s996_s28, 3 }
  0x26   : > { %s1345_s10 = scalar_select %p1177_p2, 1, 0 }
  0x27   : > { %p527_p5 = scmp.eq.s32.totalorder %s1156_s29, 0  ;;  %p1184_p6 = pnand %p479_p3, %p82_p4 }
  0x28   : > { %s1097_s12 = smov [#allocation6]  }
  0x29   : > { %s94_s13 = sshll.u32 %s1097_s12, 4  ;;  %p519_p7 = pneg %p1184_p6  ;;  %s95_s13 = int_to_ptr.vmem [resolvable:$true] %s94_s13 }
  0x2a   : > { %s819_s14 = scalar_lea.vmem %s95_s13, 1024  ;;  %p827_p13 = scmp.lt.s32.totalorder %s95_s13, %s95_s13 }
  0x2b   : > { %p520_p8 = pnand %p527_p5, %p519_p7  ;;  %p820_p10 = scmp.ne.s32.totalorder %s95_s13, %s819_s14 }
  0x2c   : > { %p828_p0 = scmp.lt.s32.totalorder %s819_s14, %s819_s14 }
  0x2d   : > { %p810_p9 = pneg %p520_p8 }
  0x2e   : > { %p829_p2 = por %p828_p0, %p827_p13 }
  0x2f   : > { %p822_p11 = pnand %p820_p10, %p810_p9 }
  0x31   : > { %p823_p12 = pneg %p822_p11 }
  0x33   : > { %p830_p3 = pnand %p829_p2, %p823_p12 }
  0x35   : > { %833 = shalt.err (!%p830_p3)
}
  0x36   : > { %s1098_s15 = smov 128   ;;  %s1099_s16 = smov 8  }
  0x37   : > { %522 = dma.hbm_to_vmem [thread:$0]  (!%p520_p8), %s1340_s3, 1024, %s95_s13, [#allocation7], %s1098_s15, %s1098_s15, %s1099_s16  }
  0x38   : > { %110 = sbr.rel (%p1184_p6) target bundleno = 801 (0x321), region = 24 }
  0x3d   : > { %975 = dma.done.wait (%p527_p5), [#allocation7], 1024  }
  0x3e   : > { %977 = vsyncadd (%p527_p5), [#allocation7], 4294966272  ;;  %s1202_s19 = sshll.u32 %s1156_s29, 3  ;;  %s122_s20 = sand.u32 1, %s988_s26   ;;  %v1006_v0 = vmov 0.0  }
  0x3f   : > { %s126_s21 = sld [smem:[#allocation3 + %s1202_s19]]  ;;  %s483_s22 = sshll.u32 %s122_s20, 3 }
  0x40   : > { %s1209_s23 = sld [smem:[#allocation4 + %s1202_s19]]  ;;  %s1211_s24 = scalar_lea.vmem [#allocation9], %s483_s22 }
  0x46   : > { %p485_p2 = scmp.le.s32.totalorder %s1209_s23, 0 }
  0x47   : > { %s1002_s25 = smov (!%p485_p2), 0  }
  0x48   : > { %393 = sbr.rel (%p485_p2) target bundleno = 90 (0x5a), region = 119 }
  0x4d   : > { %v998_v1 = vmov 0.0  }
  0x4e LB: >> { %s135_s0 = sadd.s32 %s1004_s25, %s126_s21  ;;  %s131_s25 = sadd.s32 1, %s1004_s25   ;;  %s1004_s25 = sphi %s1002_s25, %s131_s25   ;;  %v1000_v1 = vphi %v998_v1, %v999_v1  }
  0x4f   : >> { %s136_s1 = sld [smem:[#allocation5 + %s135_s0]]  ;;  %p130_p4 = scmp.ge.s32.totalorder %s131_s25, %s1209_s23 }
  0x55   : >> { %s137_s30 = scalar_lea.vmem [#allocation6], %s136_s1  ;;  %133 = sbr.rel (!%p130_p4) target bundleno = 78 (0x4e), region = 125 }
  0x56   : >> { %v138_v2 = vld [vmem:[%s137_s30] sm:$0x1] }
  0x57   : >> { %v139_v3 = vadd.f32 %v1000_v1, %v138_v2  }
  0x59   : >> { %v999_v1 = vmov %v139_v3   ;;  %v1007_v0 = vmov (%p130_p4), %v139_v3  }
  0x5a PF: > { %p141_p5 = scmp.gt.s32.totalorder %s1209_s23, 1  ;;  %s151_s6 = sadd.s32 1, %s1202_s19  ;;  %v1018_v8 = vmov 0.0   ;;  %v1008_v0 = vphi %v1006_v0, %v1007_v0  }
  0x5b   : > { %s1218_s11 = sld [smem:[#allocation3 + %s151_s6]]  ;;  %p140_p6 = scmp.gt.s32.totalorder %s1209_s23, 0 }
  0x5c   : > { %s142_s7 = scalar_select %p141_p5, %s1209_s23, 1 }
  0x5d   : > { %s1220_s13 = sld [smem:[#allocation4 + %s151_s6]] }
  0x5e   : > { %s143_s12 = scvt.s32.f32 %s142_s7 }
  0x60   : > { %v144_v4 = vstv %s143_s12 }
  0x61   : > { %760 = vrcp.f32 %v144_v4 }
  0x63   : > { %p486_p7 = scmp.le.s32.totalorder %s1220_s13, 0 }
  0x64   : > { %s1014_s15 = smov (!%p486_p7), 0  }
  0x6e   : > { %v761_v5 = vpop.eup %760 }
  0x6f   : > { %497 = vpush %v761_v5 }
  0xa0   : > { %s498_s14 = spop %497 }
  0xa1   : > { %s1353_s14 = smov (!%p140_p6, %s498_s14), 0.0  ;;  %401 = sbr.rel (%p486_p7) target bundleno = 179 (0xb3), region = 130 }
  0xa2   : > { %v148_v6 = vstv %s1353_s14 }
  0xa3   : > { %v149_v7 = vmul.f32 %v1008_v0, %v148_v6 }
  0xa5   : > { %150 = vst [vmem:[%s1211_s24] sm:$0x1] %v149_v7 }
  0xa6   : > { %v1010_v9 = vmov 0.0  }
  0xa7 LB: >> { %s161_s16 = sadd.s32 %s1016_s15, %s1218_s11  ;;  %s157_s15 = sadd.s32 1, %s1016_s15   ;;  %s1016_s15 = sphi %s1014_s15, %s157_s15   ;;  %v1012_v9 = vphi %v1010_v9, %v1011_v9  }
  0xa8   : >> { %s162_s17 = sld [smem:[#allocation5 + %s161_s16]]  ;;  %p156_p8 = scmp.ge.s32.totalorder %s157_s15, %s1220_s13 }
  0xae   : >> { %s163_s18 = scalar_lea.vmem [#allocation6], %s162_s17  ;;  %159 = sbr.rel (!%p156_p8) target bundleno = 167 (0xa7), region = 136 }
  0xaf   : >> { %v164_v10 = vld [vmem:[%s163_s18] sm:$0x1] }
  0xb0   : >> { %v165_v11 = vadd.f32 %v1012_v9, %v164_v10  }
  0xb2   : >> { %v1011_v9 = vmov %v165_v11   ;;  %v1019_v8 = vmov (%p156_p8), %v165_v11  }
  0xb3 PF: > { %p167_p9 = scmp.gt.s32.totalorder %s1220_s13, 1  ;;  %s177_s21 = sadd.s32 2, %s1202_s19  ;;  %v1030_v16 = vmov 0.0   ;;  %v1020_v8 = vphi %v1018_v8, %v1019_v8  }
  0xb4   : > { %s1230_s23 = sld [smem:[#allocation3 + %s177_s21]]  ;;  %p166_p10 = scmp.gt.s32.totalorder %s1220_s13, 0 }
  0xb5   : > { %s168_s22 = scalar_select %p167_p9, %s1220_s13, 1 }
  0xb6   : > { %s1232_s0 = sld [smem:[#allocation4 + %s177_s21]] }
  0xb7   : > { %s169_s25 = scvt.s32.f32 %s168_s22 }
  0xb9   : > { %v170_v12 = vstv %s169_s25 }
  0xba   : > { %762 = vrcp.f32 %v170_v12 }
  0xbc   : > { %p487_p11 = scmp.le.s32.totalorder %s1232_s0, 0 }
  0xbd   : > { %s1026_s30 = smov (!%p487_p11), 0  }
  0xc7   : > { %v763_v13 = vpop.eup %762 }
  0xc8   : > { %499 = vpush %v763_v13 }
  0xf9   : > { %s500_s1 = spop %499 }
  0xfa   : > { %s1355_s1 = smov (!%p166_p10, %s500_s1), 0.0  ;;  %409 = sbr.rel (%p487_p11) target bundleno = 268 (0x10c), region = 141 }
  0xfb   : > { %v174_v14 = vstv %s1355_s1 }
  0xfc   : > { %v175_v15 = vmul.f32 %v1020_v8, %v174_v14 }
  0xfe   : > { %176 = vst [vmem:[%s1211_s24 + $0x1] sm:$0x1] %v175_v15 }
  0xff   : > { %v1022_v17 = vmov 0.0  }
 0x100 LB: >> { %s187_s6 = sadd.s32 %s1028_s30, %s1230_s23  ;;  %s183_s30 = sadd.s32 1, %s1028_s30   ;;  %s1028_s30 = sphi %s1026_s30, %s183_s30   ;;  %v1024_v17 = vphi %v1022_v17, %v1023_v17  }
 0x101   : >> { %s188_s7 = sld [smem:[#allocation5 + %s187_s6]]  ;;  %p182_p12 = scmp.ge.s32.totalorder %s183_s30, %s1232_s0 }
 0x107   : >> { %s189_s11 = scalar_lea.vmem [#allocation6], %s188_s7  ;;  %185 = sbr.rel (!%p182_p12) target bundleno = 256 (0x100), region = 147 }
 0x108   : >> { %v190_v18 = vld [vmem:[%s189_s11] sm:$0x1] }
 0x109   : >> { %v191_v19 = vadd.f32 %v1024_v17, %v190_v18  }
 0x10b   : >> { %v1023_v17 = vmov %v191_v19   ;;  %v1031_v16 = vmov (%p182_p12), %v191_v19  }
 0x10c PF: > { %p193_p13 = scmp.gt.s32.totalorder %s1232_s0, 1  ;;  %s203_s12 = sadd.s32 3, %s1202_s19  ;;  %v1042_v24 = vmov 0.0   ;;  %v1032_v16 = vphi %v1030_v16, %v1031_v16  }
 0x10d   : > { %s1242_s14 = sld [smem:[#allocation3 + %s203_s12]]  ;;  %p192_p0 = scmp.gt.s32.totalorder %s1232_s0, 0 }
 0x10e   : > { %s194_s13 = scalar_select %p193_p13, %s1232_s0, 1 }
 0x10f   : > { %s1244_s16 = sld [smem:[#allocation4 + %s203_s12]] }
 0x110   : > { %s195_s15 = scvt.s32.f32 %s194_s13 }
 0x112   : > { %v196_v20 = vstv %s195_s15 }
 0x113   : > { %764 = vrcp.f32 %v196_v20 }
 0x115   : > { %p488_p3 = scmp.le.s32.totalorder %s1244_s16, 0 }
 0x116   : > { %s1038_s18 = smov (!%p488_p3), 0  }
 0x120   : > { %v765_v21 = vpop.eup %764 }
 0x121   : > { %501 = vpush %v765_v21 }
 0x152   : > { %s502_s17 = spop %501 }
 0x153   : > { %s1357_s17 = smov (!%p192_p0, %s502_s17), 0.0  ;;  %417 = sbr.rel (%p488_p3) target bundleno = 357 (0x165), region = 152 }
 0x154   : > { %v200_v22 = vstv %s1357_s17 }
 0x155   : > { %v201_v23 = vmul.f32 %v1032_v16, %v200_v22 }
 0x157   : > { %202 = vst [vmem:[%s1211_s24 + $0x2] sm:$0x1] %v201_v23 }
 0x158   : > { %v1034_v25 = vmov 0.0  }
 0x159 LB: >> { %s213_s21 = sadd.s32 %s1040_s18, %s1242_s14  ;;  %s209_s18 = sadd.s32 1, %s1040_s18   ;;  %s1040_s18 = sphi %s1038_s18, %s209_s18   ;;  %v1036_v25 = vphi %v1034_v25, %v1035_v25  }
 0x15a   : >> { %s214_s22 = sld [smem:[#allocation5 + %s213_s21]]  ;;  %p208_p2 = scmp.ge.s32.totalorder %s209_s18, %s1244_s16 }
 0x160   : >> { %s215_s23 = scalar_lea.vmem [#allocation6], %s214_s22  ;;  %211 = sbr.rel (!%p208_p2) target bundleno = 345 (0x159), region = 158 }
 0x161   : >> { %v216_v26 = vld [vmem:[%s215_s23] sm:$0x1] }
 0x162   : >> { %v217_v27 = vadd.f32 %v1036_v25, %v216_v26  }
 0x164   : >> { %v1035_v25 = vmov %v217_v27   ;;  %v1043_v24 = vmov (%p208_p2), %v217_v27  }
 0x165 PF: > { %p219_p4 = scmp.gt.s32.totalorder %s1244_s16, 1  ;;  %s229_s25 = sadd.s32 4, %s1202_s19  ;;  %v1054_v32 = vmov 0.0   ;;  %v1044_v24 = vphi %v1042_v24, %v1043_v24  }
 0x166   : > { %s1254_s1 = sld [smem:[#allocation3 + %s229_s25]]  ;;  %p218_p5 = scmp.gt.s32.totalorder %s1244_s16, 0 }
 0x167   : > { %s220_s0 = scalar_select %p219_p4, %s1244_s16, 1 }
 0x168   : > { %s1256_s6 = sld [smem:[#allocation4 + %s229_s25]] }
 0x169   : > { %s221_s30 = scvt.s32.f32 %s220_s0 }
 0x16b   : > { %v222_v28 = vstv %s221_s30 }
 0x16c   : > { %766 = vrcp.f32 %v222_v28 }
 0x16e   : > { %p489_p6 = scmp.le.s32.totalorder %s1256_s6, 0 }
 0x16f   : > { %s1050_s11 = smov (!%p489_p6), 0  }
 0x179   : > { %v767_v29 = vpop.eup %766 }
 0x17a   : > { %503 = vpush %v767_v29 }
 0x1ab   : > { %s504_s7 = spop %503 }
 0x1ac   : > { %s1359_s7 = smov (!%p218_p5, %s504_s7), 0.0  ;;  %425 = sbr.rel (%p489_p6) target bundleno = 446 (0x1be), region = 163 }
 0x1ad   : > { %v226_v30 = vstv %s1359_s7 }
 0x1ae   : > { %v227_v31 = vmul.f32 %v1044_v24, %v226_v30 }
 0x1b0   : > { %228 = vst [vmem:[%s1211_s24 + $0x3] sm:$0x1] %v227_v31 }
 0x1b1   : > { %v1046_v33 = vmov 0.0  }
 0x1b2 LB: >> { %s239_s12 = sadd.s32 %s1052_s11, %s1254_s1  ;;  %s235_s11 = sadd.s32 1, %s1052_s11   ;;  %s1052_s11 = sphi %s1050_s11, %s235_s11   ;;  %v1048_v33 = vphi %v1046_v33, %v1047_v33  }
 0x1b3   : >> { %s240_s13 = sld [smem:[#allocation5 + %s239_s12]]  ;;  %p234_p7 = scmp.ge.s32.totalorder %s235_s11, %s1256_s6 }
 0x1b9   : >> { %s241_s14 = scalar_lea.vmem [#allocation6], %s240_s13  ;;  %237 = sbr.rel (!%p234_p7) target bundleno = 434 (0x1b2), region = 169 }
 0x1ba   : >> { %v242_v34 = vld [vmem:[%s241_s14] sm:$0x1] }
 0x1bb   : >> { %v243_v35 = vadd.f32 %v1048_v33, %v242_v34  }
 0x1bd   : >> { %v1047_v33 = vmov %v243_v35   ;;  %v1055_v32 = vmov (%p234_p7), %v243_v35  }
 0x1be PF: > { %p245_p8 = scmp.gt.s32.totalorder %s1256_s6, 1  ;;  %s255_s15 = sadd.s32 5, %s1202_s19  ;;  %v1066_v40 = vmov 0.0   ;;  %v1056_v32 = vphi %v1054_v32, %v1055_v32  }
 0x1bf   : > { %s1266_s17 = sld [smem:[#allocation3 + %s255_s15]]  ;;  %p244_p9 = scmp.gt.s32.totalorder %s1256_s6, 0 }
 0x1c0   : > { %s246_s16 = scalar_select %p245_p8, %s1256_s6, 1 }
 0x1c1   : > { %s1268_s21 = sld [smem:[#allocation4 + %s255_s15]] }
 0x1c2   : > { %s247_s18 = scvt.s32.f32 %s246_s16 }
 0x1c4   : > { %v248_v36 = vstv %s247_s18 }
 0x1c5   : > { %768 = vrcp.f32 %v248_v36 }
 0x1c7   : > { %p490_p10 = scmp.le.s32.totalorder %s1268_s21, 0 }
 0x1c8   : > { %s1062_s23 = smov (!%p490_p10), 0  }
 0x1d2   : > { %v769_v37 = vpop.eup %768 }
 0x1d3   : > { %505 = vpush %v769_v37 }
 0x204   : > { %s506_s22 = spop %505 }
 0x205   : > { %s1361_s22 = smov (!%p244_p9, %s506_s22), 0.0  ;;  %433 = sbr.rel (%p490_p10) target bundleno = 535 (0x217), region = 174 }
 0x206   : > { %v252_v38 = vstv %s1361_s22 }
 0x207   : > { %v253_v39 = vmul.f32 %v1056_v32, %v252_v38 }
 0x209   : > { %254 = vst [vmem:[%s1211_s24 + $0x4] sm:$0x1] %v253_v39 }
 0x20a   : > { %v1058_v41 = vmov 0.0  }
 0x20b LB: >> { %s265_s25 = sadd.s32 %s1064_s23, %s1266_s17  ;;  %s261_s23 = sadd.s32 1, %s1064_s23   ;;  %s1064_s23 = sphi %s1062_s23, %s261_s23   ;;  %v1060_v41 = vphi %v1058_v41, %v1059_v41  }
 0x20c   : >> { %s266_s0 = sld [smem:[#allocation5 + %s265_s25]]  ;;  %p260_p11 = scmp.ge.s32.totalorder %s261_s23, %s1268_s21 }
 0x212   : >> { %s267_s1 = scalar_lea.vmem [#allocation6], %s266_s0  ;;  %263 = sbr.rel (!%p260_p11) target bundleno = 523 (0x20b), region = 180 }
 0x213   : >> { %v268_v42 = vld [vmem:[%s267_s1] sm:$0x1] }
 0x214   : >> { %v269_v43 = vadd.f32 %v1060_v41, %v268_v42  }
 0x216   : >> { %v1059_v41 = vmov %v269_v43   ;;  %v1067_v40 = vmov (%p260_p11), %v269_v43  }
 0x217 PF: > { %p271_p12 = scmp.gt.s32.totalorder %s1268_s21, 1  ;;  %s281_s30 = sadd.s32 6, %s1202_s19  ;;  %v1078_v48 = vmov 0.0   ;;  %v1068_v40 = vphi %v1066_v40, %v1067_v40  }
 0x218   : > { %s1278_s7 = sld [smem:[#allocation3 + %s281_s30]]  ;;  %p270_p13 = scmp.gt.s32.totalorder %s1268_s21, 0 }
 0x219   : > { %s272_s6 = scalar_select %p271_p12, %s1268_s21, 1 }
 0x21a   : > { %s1280_s12 = sld [smem:[#allocation4 + %s281_s30]] }
 0x21b   : > { %s273_s11 = scvt.s32.f32 %s272_s6 }
 0x21d   : > { %v274_v44 = vstv %s273_s11 }
 0x21e   : > { %770 = vrcp.f32 %v274_v44 }
 0x220   : > { %p491_p0 = scmp.le.s32.totalorder %s1280_s12, 0 }
 0x221   : > { %s1074_s14 = smov (!%p491_p0), 0  }
 0x22b   : > { %v771_v45 = vpop.eup %770 }
 0x22c   : > { %507 = vpush %v771_v45 }
 0x25d   : > { %s508_s13 = spop %507 }
 0x25e   : > { %s1363_s13 = smov (!%p270_p13, %s508_s13), 0.0  ;;  %441 = sbr.rel (%p491_p0) target bundleno = 624 (0x270), region = 185 }
 0x25f   : > { %v278_v46 = vstv %s1363_s13 }
 0x260   : > { %v279_v47 = vmul.f32 %v1068_v40, %v278_v46 }
 0x262   : > { %280 = vst [vmem:[%s1211_s24 + $0x5] sm:$0x1] %v279_v47 }
 0x263   : > { %v1070_v49 = vmov 0.0  }
 0x264 LB: >> { %s291_s15 = sadd.s32 %s1076_s14, %s1278_s7  ;;  %s287_s14 = sadd.s32 1, %s1076_s14   ;;  %s1076_s14 = sphi %s1074_s14, %s287_s14   ;;  %v1072_v49 = vphi %v1070_v49, %v1071_v49  }
 0x265   : >> { %s292_s16 = sld [smem:[#allocation5 + %s291_s15]]  ;;  %p286_p3 = scmp.ge.s32.totalorder %s287_s14, %s1280_s12 }
 0x26b   : >> { %s293_s17 = scalar_lea.vmem [#allocation6], %s292_s16  ;;  %289 = sbr.rel (!%p286_p3) target bundleno = 612 (0x264), region = 191 }
 0x26c   : >> { %v294_v50 = vld [vmem:[%s293_s17] sm:$0x1] }
 0x26d   : >> { %v295_v51 = vadd.f32 %v1072_v49, %v294_v50  }
 0x26f   : >> { %v1071_v49 = vmov %v295_v51   ;;  %v1079_v48 = vmov (%p286_p3), %v295_v51  }
 0x270 PF: > { %p297_p2 = scmp.gt.s32.totalorder %s1280_s12, 1  ;;  %s307_s18 = sadd.s32 7, %s1202_s19  ;;  %v1090_v56 = vmov 0.0   ;;  %v1080_v48 = vphi %v1078_v48, %v1079_v48  }
 0x271   : > { %s1290_s22 = sld [smem:[#allocation3 + %s307_s18]]  ;;  %p296_p4 = scmp.gt.s32.totalorder %s1280_s12, 0 }
 0x272   : > { %s298_s21 = scalar_select %p297_p2, %s1280_s12, 1 }
 0x273   : > { %s1292_s25 = sld [smem:[#allocation4 + %s307_s18]] }
 0x274   : > { %s299_s23 = scvt.s32.f32 %s298_s21 }
 0x276   : > { %v300_v52 = vstv %s299_s23 }
 0x277   : > { %772 = vrcp.f32 %v300_v52 }
 0x279   : > { %p492_p5 = scmp.le.s32.totalorder %s1292_s25, 0 }
 0x27a   : > { %s1086_s19 = smov (!%p492_p5), 0  }
 0x284   : > { %v773_v53 = vpop.eup %772 }
 0x285   : > { %509 = vpush %v773_v53 }
 0x2b6   : > { %s510_s0 = spop %509 }
 0x2b7   : > { %s1365_s0 = smov (!%p296_p4, %s510_s0), 0.0  ;;  %449 = sbr.rel (%p492_p5) target bundleno = 713 (0x2c9), region = 196 }
 0x2b8   : > { %v304_v54 = vstv %s1365_s0 }
 0x2b9   : > { %v305_v55 = vmul.f32 %v1080_v48, %v304_v54 }
 0x2bb   : > { %306 = vst [vmem:[%s1211_s24 + $0x6] sm:$0x1] %v305_v55 }
 0x2bc   : > { %v1082_v57 = vmov 0.0  }
 0x2bd LB: >> { %s317_s1 = sadd.s32 %s1088_s19, %s1290_s22  ;;  %s313_s19 = sadd.s32 1, %s1088_s19   ;;  %s1088_s19 = sphi %s1086_s19, %s313_s19   ;;  %v1084_v57 = vphi %v1082_v57, %v1083_v57  }
 0x2be   : >> { %s318_s30 = sld [smem:[#allocation5 + %s317_s1]]  ;;  %p312_p6 = scmp.ge.s32.totalorder %s313_s19, %s1292_s25 }
 0x2c4   : >> { %s319_s6 = scalar_lea.vmem [#allocation6], %s318_s30  ;;  %315 = sbr.rel (!%p312_p6) target bundleno = 701 (0x2bd), region = 202 }
 0x2c5   : >> { %v320_v58 = vld [vmem:[%s319_s6] sm:$0x1] }
 0x2c6   : >> { %v321_v59 = vadd.f32 %v1084_v57, %v320_v58  }
 0x2c8   : >> { %v1083_v57 = vmov %v321_v59   ;;  %v1091_v56 = vmov (%p312_p6), %v321_v59  }
 0x2c9 PF: > { %p323_p7 = scmp.gt.s32.totalorder %s1292_s25, 1  ;;  %p322_p8 = scmp.gt.s32.totalorder %s1292_s25, 0  ;;  %v1092_v56 = vphi %v1090_v56, %v1091_v56  }
 0x2ca   : > { %s494_s12 = sshll.u32 %s1156_s29, 7  ;;  %s347_s14 = sshll.u32 %s1211_s24, 4  ;;  %s348_s14 = int_to_ptr.vmem [resolvable:$true] %s347_s14 }
 0x2cb   : > { %s324_s7 = scalar_select %p323_p7, %s1292_s25, 1 }
 0x2cc   : > { %s345_s17 = scalar_lea.hbm %s1341_s4, %s494_s12  ;;  %s334_s18 = scalar_lea.sflag [#allocation8], %s122_s20 }
 0x2cd   : > { %s325_s11 = scvt.s32.f32 %s324_s7  ;;  %s834_s21 = scalar_lea.vmem %s348_s14, 128 }
 0x2ce   : > { %p835_p9 = scmp.ne.s32.totalorder %s348_s14, %s834_s21  ;;  %s1100_s22 = smov [#allocation9]  }
 0x2cf   : > { %v326_v60 = vstv %s325_s11  ;;  %s838_s29 = sshll.u32 %s1100_s22, 4  ;;  %s839_s29 = int_to_ptr.vmem [resolvable:$false] %s838_s29 }
 0x2d0   : > { %774 = vrcp.f32 %v326_v60  ;;  %p836_p10 = pnand %p835_p9, %p1173_p1  ;;  %s840_s23 = scalar_lea.vmem %s839_s29, 256 }
 0x2d1   : > { %p841_p12 = scmp.lt.s32.totalorder %s348_s14, %s839_s29  ;;  %p842_p13 = scmp.lt.s32.totalorder %s840_s23, %s834_s21 }
 0x2d2   : > { %p837_p11 = pneg %p836_p10 }
 0x2d3   : > { %p843_p0 = por %p842_p13, %p841_p12 }
 0x2d5   : > { %p844_p3 = pnand %p843_p0, %p837_p11 }
 0x2dd   : > { %v775_v61 = vpop.eup %774 }
 0x2de   : > { %511 = vpush %v775_v61 }
 0x30f   : > { %s512_s13 = spop %511 }
 0x310   : > { %s1367_s13 = smov (!%p322_p8, %s512_s13), 0.0 }
 0x311   : > { %v330_v62 = vstv %s1367_s13 }
 0x312   : > { %v331_v63 = vmul.f32 %v1092_v56, %v330_v62 }
 0x314   : > { %332 = vst [vmem:[%s1211_s24 + $0x7] sm:$0x1] %v331_v63 }
 0x315   : > { %847 = shalt.err (!%p844_p3)
}
 0x316   : > { %s848_s25 = scalar_lea.hbm %s345_s17, 128  ;;  %s852_s0 = scalar_lea.hbm %s1341_s4, 256 }
 0x317   : > { %p849_p2 = scmp.ne.s32.totalorder %s345_s17, %s848_s25  ;;  %p853_p6 = scmp.lt.s32.totalorder %s345_s17, %s1341_s4 }
 0x318   : > { %p854_p7 = scmp.lt.s32.totalorder %s852_s0, %s848_s25 }
 0x319   : > { %p850_p4 = pnand %p849_p2, %p1173_p1 }
 0x31a   : > { %p855_p8 = por %p854_p7, %p853_p6 }
 0x31b   : > { %p851_p5 = pneg %p850_p4 }
 0x31d   : > { %p856_p9 = pnand %p855_p8, %p851_p5 }
 0x31f   : > { %859 = shalt.err (!%p856_p9)
}
 0x320   : > { %517 = dma.vmem_to_hbm [thread:$0]  (%p1173_p1), %s348_s14, 128, %s345_s17, %s334_s18  }
 0x321 PF: > { %p529_p10 = scmp.ge.s32.totalorder %s996_s28, 2  ;;  %s359_s30 = sand.u32 1, %s984_s2  }
 0x322   : > { %p1347_p11 = scmp.ne.s32.totalorder %s1345_s10, 0  ;;  %s360_s6 = scalar_lea.sflag [#allocation8], %s359_s30 }
 0x324   : > { %p524_p12 = pnand %p529_p10, %p1347_p11 }
 0x326   : > { %p525_p13 = pneg %p524_p12 }
 0x328   : > { %979 = dma.done.wait (%p525_p13), %s360_s6, 128  }
 0x329   : > { %981 = vsyncadd (%p525_p13), %s360_s6, 4294967168  ;;  %p27_p0 = scmp.ge.s32.totalorder %s1160_s5, 4   ;;  %s1348_s2 = smov %s988_s26 }
 0x32a   : > { %s1349_s26 = smov %s992_s27  ;;  %s1350_s27 = smov %s1171_s8 }
 0x32b   : > { %s1351_s28 = smov %s1160_s5  ;;  %29 = sbr.rel (!%p27_p0) target bundleno = 30 (0x1e), region = 213 }
 0x330   :  { %365 = vsyncpa [#allocation7], 1 }
 0x331   :  { %367 = vsyncpa [#allocation7 + $0x1], 1 }
 0x332   :  { %368 = vsyncpa [#allocation8], 1 }
 0x333   :  { %370 = vsyncpa [#allocation8 + $0x1], 1 }

</bundles_post_ra>
